<compile_context>
chip_gen: v7x
topology: tpu7x:2x2x1
jax: 0.10.0
libtpu: 0.0.40
codegen_flags: <defaults>
</compile_context>

<pallas_src>
import jax
import jax.numpy as jnp
from jax.experimental import pallas as pl
from jax.experimental.pallas import tpu as pltpu


def fc_layer_kernel(x_ref, wt_ref, b_ref, gamma_ref, beta_ref, o_ref, acc_ref):
    # x_ref:  (B, TILE_K)        native dtype
    # wt_ref: (TILE_K, TILE_N)   native dtype (weight pre-transposed to (IN, OUT))
    # b/gamma/beta: (1, TILE_N)
    # o_ref:  (B, TILE_N)
    # acc_ref: (B, TILE_N) f32 accumulator scratch (persists across K steps)
    k = pl.program_id(1)

    @pl.when(k == 0)
    def _():
        acc_ref[...] = jnp.zeros_like(acc_ref)

    # MXU matmul in native dtype, f32 accumulation. No transpose, no upcast.
    acc_ref[...] += jnp.dot(x_ref[...], wt_ref[...],
                            preferred_element_type=jnp.float32)

    @pl.when(k == pl.num_programs(1) - 1)
    def _():
        y = acc_ref[...] + b_ref[...].astype(jnp.float32)   # Linear bias
        y = jnp.maximum(y, 0.0)                              # ReLU

        # BatchNorm1d training-mode forward, fused single-pass statistics:
        #   mean = sum(y)/B ; var = sum(y*y)/B - mean^2   (biased variance)
        inv_b = jnp.float32(1.0 / y.shape[0])
        s = jnp.sum(y, axis=0, keepdims=True)
        s2 = jnp.sum(y * y, axis=0, keepdims=True)
        mean = s * inv_b
        var = jnp.maximum(s2 * inv_b - mean * mean, 0.0)     # guard cancellation
        inv_std = jax.lax.rsqrt(var + jnp.float32(1e-5))
        scale = inv_std * gamma_ref[...].astype(jnp.float32)
        shift = beta_ref[...].astype(jnp.float32) - mean * scale
        o_ref[...] = (y * scale + shift).astype(o_ref.dtype)


def _round_up(v, m):
    return ((v + m - 1) // m) * m


def fc_layer(x, w, b, gamma, beta):
    """FCLayer forward. x: (B, IN); w: (OUT, IN) torch.nn.Linear layout;
    b, gamma, beta: (OUT,). Returns (B, OUT)."""
    B, IN = x.shape
    OUT = w.shape[0]

    # Pre-transpose the weight once in the wrapper (outside the kernel) so the
    # kernel body never pays for an XLU transpose.
    w_t = jnp.transpose(w)                                   # (IN, OUT)

    # ---- generation-friendly tile sizes --------------------------------
    # OUT: pad to a lane-dense multiple of 128; tile at 256 when it divides
    # (v6e/v7x 2x256 MXU), else 128 (v5e quantum / small OUT).
    out_p = _round_up(OUT, 128)
    tile_n = min(out_p, 256) if out_p % 256 == 0 else 128
    # IN: small K stays a single full-extent block; large K streams in
    # 256-wide chunks so weight tiles are double-buffered over HBM.
    if IN <= 512:
        in_p, tile_k = IN, IN
    else:
        in_p, tile_k = _round_up(IN, 256), 256

    # ---- zero-pad to the tiled shapes (padding is sliced off after) ----
    if in_p != IN:
        x = jnp.pad(x, ((0, 0), (0, in_p - IN)))
        w_t = jnp.pad(w_t, ((0, in_p - IN), (0, 0)))
    if out_p != OUT:
        w_t = jnp.pad(w_t, ((0, 0), (0, out_p - OUT)))
        b = jnp.pad(b, (0, out_p - OUT))
        gamma = jnp.pad(gamma, (0, out_p - OUT), constant_values=1.0)
        beta = jnp.pad(beta, (0, out_p - OUT))

    b2 = b.reshape(1, out_p)
    g2 = gamma.reshape(1, out_p)
    be2 = beta.reshape(1, out_p)

    grid = (out_p // tile_n, in_p // tile_k)

    out = pl.pallas_call(
        fc_layer_kernel,
        out_shape=jax.ShapeDtypeStruct((B, out_p), x.dtype),
        grid_spec=pltpu.PrefetchScalarGridSpec(
            num_scalar_prefetch=0,
            grid=grid,
            in_specs=[
                pl.BlockSpec((B, tile_k), lambda j, k: (0, k)),        # x
                pl.BlockSpec((tile_k, tile_n), lambda j, k: (k, j)),   # W^T
                pl.BlockSpec((1, tile_n), lambda j, k: (0, j)),        # bias
                pl.BlockSpec((1, tile_n), lambda j, k: (0, j)),        # gamma
                pl.BlockSpec((1, tile_n), lambda j, k: (0, j)),        # beta
            ],
            out_specs=pl.BlockSpec((B, tile_n), lambda j, k: (0, j)),
            scratch_shapes=[pltpu.VMEM((B, tile_n), jnp.float32)],
        ),
        compiler_params=pltpu.CompilerParams(
            # OUT tiles are independent (megacore-parallel on v7x);
            # IN is the trailing reduction axis.
            dimension_semantics=("parallel", "arbitrary"),
            # Sized with headroom against v7x's 64 MiB physical VMEM.
            vmem_limit_bytes=48 << 20,
        ),
    )(x, w_t, b2, g2, be2)

    return out[:, :OUT] if out_p != OUT else out


def fc_layer_ref(x, w, b, gamma, beta):
    """Pure-JAX reference matching PyTorch Linear->ReLU->BatchNorm1d(train)."""
    y = x @ w.T + b
    y = jnp.maximum(y, 0.0)
    mean = jnp.mean(y, axis=0, keepdims=True)
    var = jnp.mean((y - mean) ** 2, axis=0, keepdims=True)
    y = (y - mean) / jnp.sqrt(var + 1e-5)
    return y * gamma + beta


def _run_case(key, B, IN, OUT):
    kx, kw, kb, kg, kbe = jax.random.split(key, 5)
    x = jax.random.normal(kx, (B, IN), dtype=jnp.float32)
    w = jax.random.normal(kw, (OUT, IN), dtype=jnp.float32) * 0.1
    b = jax.random.normal(kb, (OUT,), dtype=jnp.float32) * 0.1
    gamma = 1.0 + 0.05 * jax.random.normal(kg, (OUT,), dtype=jnp.float32)
    beta = 0.05 * jax.random.normal(kbe, (OUT,), dtype=jnp.float32)

    out = jax.block_until_ready(fc_layer(x, w, b, gamma, beta))
    ref = fc_layer_ref(x, w, b, gamma, beta)
    assert out.shape == (B, OUT)
    assert jnp.allclose(out, ref, atol=1e-4, rtol=1e-4), \
        f"mismatch vs reference for shapes B={B} IN={IN} OUT={OUT}"


if __name__ == "__main__":
    key = jax.random.PRNGKey(0)
    k0, k1 = jax.random.split(key)

    # FCLayer(linear_args={'in_features': 32, 'out_features': 128}) — aligned.
    _run_case(k0, B=8, IN=32, OUT=128)
    # Non-128-aligned OUT exercises the lane-dense padding + slice path.
    _run_case(k1, B=8, IN=48, OUT=96)

    print("KERNEL_OK")
</pallas_src>

<mosaic_0001>
module attributes {stable_mosaic.version = 11 : i64} {
  func.func @fc_layer_kernel(%arg0: i32, %arg1: i32, %arg2: memref<8x32xf32, #tpu.memory_space<vmem>>, %arg3: memref<32x128xf32, #tpu.memory_space<vmem>>, %arg4: memref<1x128xf32, #tpu.memory_space<vmem>>, %arg5: memref<1x128xf32, #tpu.memory_space<vmem>>, %arg6: memref<1x128xf32, #tpu.memory_space<vmem>>, %arg7: memref<8x128xf32, #tpu.memory_space<vmem>>, %arg8: memref<8x128xf32, #tpu.memory_space<vmem>>) attributes {dimension_semantics = [#tpu.dimension_semantics<parallel>, #tpu.dimension_semantics<arbitrary>], iteration_bounds = array<i64: 1, 1>, scalar_prefetch = 0 : i64, scratch_operands = 1 : i64, tpu.core_type = #tpu.core_type<tc>, window_params = [{transform_indices = @transform_0, window_bounds = array<i64: 8, 32>}, {transform_indices = @transform_1, window_bounds = array<i64: 32, 128>}, {transform_indices = @transform_2, window_bounds = array<i64: 1, 128>}, {transform_indices = @transform_3, window_bounds = array<i64: 1, 128>}, {transform_indices = @transform_4, window_bounds = array<i64: 1, 128>}, {transform_indices = @transform_5, window_bounds = array<i64: 8, 128>}]} {
    %c0_i32 = arith.constant 0 : i32
    %0 = arith.cmpi eq, %arg1, %c0_i32 : i32
    %1 = arith.extui %0 : i1 to i32
    %c0_i32_0 = arith.constant 0 : i32
    %2 = arith.cmpi ne, %1, %c0_i32_0 : i32
    scf.if %2 {
      %cst_10 = arith.constant 0.000000e+00 : f32
      %12 = vector.broadcast %cst_10 : f32 to vector<8x128xf32>
      %c0_11 = arith.constant 0 : index
      %c0_12 = arith.constant 0 : index
      %13 = vector.load %arg8[%c0_11, %c0_12] : memref<8x128xf32, #tpu.memory_space<vmem>>, vector<8x128xf32>
      tpu.vector_store %arg8[%c0_11, %c0_12], %12 {strides = array<i32>} : memref<8x128xf32, #tpu.memory_space<vmem>>, vector<8x128xf32>,
    } else {
    }
    %c0 = arith.constant 0 : index
    %c0_1 = arith.constant 0 : index
    %3 = vector.load %arg8[%c0, %c0_1] : memref<8x128xf32, #tpu.memory_space<vmem>>, vector<8x128xf32>
    %c0_2 = arith.constant 0 : index
    %c0_3 = arith.constant 0 : index
    %4 = vector.load %arg2[%c0_2, %c0_3] : memref<8x32xf32, #tpu.memory_space<vmem>>, vector<8x32xf32>
    %c0_4 = arith.constant 0 : index
    %c0_5 = arith.constant 0 : index
    %5 = vector.load %arg3[%c0_4, %c0_5] : memref<32x128xf32, #tpu.memory_space<vmem>>, vector<32x128xf32>
    %cst = arith.constant dense<0.000000e+00> : vector<8x128xf32>
    %6 = tpu.matmul %4, %5, %cst {dimension_numbers = #tpu.dot_dimension_numbers<[1], [0], [0], [1], [0, 0, 1, 1], [], []>} : vector<8x32xf32>, vector<32x128xf32>, vector<8x128xf32> -> vector<8x128xf32>
    %7 = arith.addf %3, %6 : vector<8x128xf32>
    %c0_6 = arith.constant 0 : index
    %c0_7 = arith.constant 0 : index
    %8 = vector.load %arg8[%c0_6, %c0_7] : memref<8x128xf32, #tpu.memory_space<vmem>>, vector<8x128xf32>
    tpu.vector_store %arg8[%c0_6, %c0_7], %7 {strides = array<i32>} : memref<8x128xf32, #tpu.memory_space<vmem>>, vector<8x128xf32>,
    %c0_i32_8 = arith.constant 0 : i32
    %9 = arith.cmpi eq, %arg1, %c0_i32_8 : i32
    %10 = arith.extui %9 : i1 to i32
    %c0_i32_9 = arith.constant 0 : i32
    %11 = arith.cmpi ne, %10, %c0_i32_9 : i32
    scf.if %11 {
      %c0_10 = arith.constant 0 : index
      %c0_11 = arith.constant 0 : index
      %12 = vector.load %arg8[%c0_10, %c0_11] : memref<8x128xf32, #tpu.memory_space<vmem>>, vector<8x128xf32>
      %c0_12 = arith.constant 0 : index
      %c0_13 = arith.constant 0 : index
      %13 = vector.load %arg4[%c0_12, %c0_13] : memref<1x128xf32, #tpu.memory_space<vmem>>, vector<1x128xf32>
      %14 = vector.broadcast %13 : vector<1x128xf32> to vector<8x128xf32>
      %15 = arith.addf %12, %14 : vector<8x128xf32>
      %cst_14 = arith.constant 0.000000e+00 : f32
      %16 = vector.broadcast %cst_14 : f32 to vector<8x128xf32>
      %17 = arith.maximumf %15, %16 : vector<8x128xf32>
      %cst_15 = arith.constant dense<0.000000e+00> : vector<128xf32>
      %18 = vector.multi_reduction <add>, %17, %cst_15 [0] : vector<8x128xf32> to vector<128xf32>
      %19 = vector.shape_cast %18 : vector<128xf32> to vector<1x128xf32>
      %20 = arith.mulf %17, %17 : vector<8x128xf32>
      %cst_16 = arith.constant dense<0.000000e+00> : vector<128xf32>
      %21 = vector.multi_reduction <add>, %20, %cst_16 [0] : vector<8x128xf32> to vector<128xf32>
      %22 = vector.shape_cast %21 : vector<128xf32> to vector<1x128xf32>
      %cst_17 = arith.constant 1.250000e-01 : f32
      %23 = vector.broadcast %cst_17 : f32 to vector<1x128xf32>
      %24 = arith.mulf %19, %23 : vector<1x128xf32>
      %cst_18 = arith.constant 1.250000e-01 : f32
      %25 = vector.broadcast %cst_18 : f32 to vector<1x128xf32>
      %26 = arith.mulf %22, %25 : vector<1x128xf32>
      %27 = arith.mulf %24, %24 : vector<1x128xf32>
      %28 = arith.subf %26, %27 : vector<1x128xf32>
      %cst_19 = arith.constant 0.000000e+00 : f32
      %29 = vector.broadcast %cst_19 : f32 to vector<1x128xf32>
      %30 = arith.maximumf %28, %29 : vector<1x128xf32>
      %cst_20 = arith.constant 9.99999974E-6 : f32
      %31 = vector.broadcast %cst_20 : f32 to vector<1x128xf32>
      %32 = arith.addf %30, %31 : vector<1x128xf32>
      %33 = math.rsqrt %32 : vector<1x128xf32>
      %c0_21 = arith.constant 0 : index
      %c0_22 = arith.constant 0 : index
      %34 = vector.load %arg5[%c0_21, %c0_22] : memref<1x128xf32, #tpu.memory_space<vmem>>, vector<1x128xf32>
      %35 = arith.mulf %33, %34 : vector<1x128xf32>
      %c0_23 = arith.constant 0 : index
      %c0_24 = arith.constant 0 : index
      %36 = vector.load %arg6[%c0_23, %c0_24] : memref<1x128xf32, #tpu.memory_space<vmem>>, vector<1x128xf32>
      %37 = arith.mulf %24, %35 : vector<1x128xf32>
      %38 = arith.subf %36, %37 : vector<1x128xf32>
      %39 = vector.broadcast %35 : vector<1x128xf32> to vector<8x128xf32>
      %40 = arith.mulf %17, %39 : vector<8x128xf32>
      %41 = vector.broadcast %38 : vector<1x128xf32> to vector<8x128xf32>
      %42 = arith.addf %40, %41 : vector<8x128xf32>
      %c0_25 = arith.constant 0 : index
      %c0_26 = arith.constant 0 : index
      %43 = vector.load %arg7[%c0_25, %c0_26] : memref<8x128xf32, #tpu.memory_space<vmem>>, vector<8x128xf32>
      tpu.vector_store %arg7[%c0_25, %c0_26], %42 {strides = array<i32>} : memref<8x128xf32, #tpu.memory_space<vmem>>, vector<8x128xf32>,
    } else {
    }
    return
  }
  func.func @transform_0(%arg0: i32, %arg1: i32) -> (i32, i32) {
    %c0_i32 = arith.constant 0 : i32
    %c0_i32_0 = arith.constant 0 : i32
    return %c0_i32, %arg1 : i32, i32
  }
  func.func @transform_1(%arg0: i32, %arg1: i32) -> (i32, i32) {
    %c0_i32 = arith.constant 0 : i32
    return %arg1, %arg0 : i32, i32
  }
  func.func @transform_2(%arg0: i32, %arg1: i32) -> (i32, i32) {
    %c0_i32 = arith.constant 0 : i32
    %c0_i32_0 = arith.constant 0 : i32
    return %c0_i32, %arg0 : i32, i32
  }
  func.func @transform_3(%arg0: i32, %arg1: i32) -> (i32, i32) {
    %c0_i32 = arith.constant 0 : i32
    %c0_i32_0 = arith.constant 0 : i32
    return %c0_i32, %arg0 : i32, i32
  }
  func.func @transform_4(%arg0: i32, %arg1: i32) -> (i32, i32) {
    %c0_i32 = arith.constant 0 : i32
    %c0_i32_0 = arith.constant 0 : i32
    return %c0_i32, %arg0 : i32, i32
  }
  func.func @transform_5(%arg0: i32, %arg1: i32) -> (i32, i32) {
    %c0_i32 = arith.constant 0 : i32
    %c0_i32_0 = arith.constant 0 : i32
    return %c0_i32, %arg0 : i32, i32
  }
}

</mosaic_0001>

<bundles_post_ra>
// kernel: tpu_custom_call.1
= control target key start
LH: loop header
LB: loop body
LE: loop exit
PB: predicated region body
PF: predicated region fallthrough
CT: control target
= control target key end

     0   :  { %10 = vsyncpa [#allocation4], 0  ;;  %s397_s0 = inlined_call_operand.hbm [shape: f32[8,32], index: 0, kind: input, shape index: {}]   ;;  %s398_s1 = inlined_call_operand.hbm [shape: f32[32,128], index: 1, kind: input, shape index: {}]   ;;  %s399_s2 = inlined_call_operand.vmem [shape: f32[1,128], index: 2, kind: input, shape index: {}]   ;;  %s400_s3 = inlined_call_operand.vmem [shape: f32[1,128], index: 3, kind: input, shape index: {}]   ;;  %s401_s4 = inlined_call_operand.vmem [shape: f32[1,128], index: 4, kind: input, shape index: {}]   ;;  %s402_s5 = inlined_call_operand.hbm [shape: f32[8,128], index: 5, kind: output, shape index: {}]  }
   0x1   :  { %11 = vsyncpa [#allocation7], 0 }
   0x2   :  { %12 = vsyncpa [#allocation5], 0  ;;  %s307_s18 = smov [#allocation3]   ;;  %s308_s20 = smov [#allocation6]  }
   0x3   :  { %s19_s19 = sshll.u32 %s307_s18, 4  ;;  %s28_s21 = sshll.u32 %s308_s20, 4  ;;  %s20_s19 = int_to_ptr.vmem [resolvable:$true] %s19_s19  ;;  %s345_s21 = int_to_ptr.vmem [resolvable:$true] %s28_s21 }
   0x4   :  { %s235_s24 = scalar_lea.hbm %s397_s0, 128 }
   0x5   :  { %p236_p0 = scmp.ne.s32.totalorder %s397_s0, %s235_s24  ;;  %p239_p1 = scmp.lt.u32.totalorder %s235_s24, %s397_s0 }
   0x7   :  { %p241_p2 = pnand %p239_p1, %p236_p0 }
   0x9   :  { %244 = shalt.err (!%p241_p2)
}
   0xa   :  { %s245_s29 = scalar_lea.vmem %s20_s19, 128  ;;  %p250_p4 = scmp.lt.s32.totalorder %s20_s19, %s20_s19 }
   0xb   :  { %p246_p3 = scmp.ne.s32.totalorder %s20_s19, %s245_s29  ;;  %p251_p5 = scmp.lt.s32.totalorder %s245_s29, %s245_s29 }
   0xd   :  { %p252_p6 = por %p251_p5, %p250_p4 }
   0xf   :  { %p253_p7 = pnand %p252_p6, %p246_p3 }
  0x11   :  { %256 = shalt.err (!%p253_p7)
}
  0x12   :  { %22 = dma.hbm_to_vmem [thread:$0]  %s397_s0, 128, %s20_s19, [#allocation4]  }
  0x13   :  { %s257_s9 = scalar_lea.hbm %s398_s1, 512 }
  0x14   :  { %p258_p8 = scmp.ne.s32.totalorder %s398_s1, %s257_s9  ;;  %p261_p9 = scmp.lt.u32.totalorder %s257_s9, %s398_s1 }
  0x16   :  { %p263_p10 = pnand %p261_p9, %p258_p8 }
  0x18   :  { %266 = shalt.err (!%p263_p10)
}
  0x19   :  { %s267_s14 = scalar_lea.vmem %s345_s21, 512  ;;  %p272_p12 = scmp.lt.s32.totalorder %s345_s21, %s345_s21 }
  0x1a   :  { %p268_p11 = scmp.ne.s32.totalorder %s345_s21, %s267_s14  ;;  %p273_p13 = scmp.lt.s32.totalorder %s267_s14, %s267_s14 }
  0x1c   :  { %p274_p0 = por %p273_p13, %p272_p12 }
  0x1e   :  { %p275_p1 = pnand %p274_p0, %p268_p11 }
  0x20   :  { %278 = shalt.err (!%p275_p1)
}
  0x21   :  { %s309_s0 = smov 128   ;;  %s310_s15 = smov 8  }
  0x22   :  { %34 = dma.hbm_to_vmem [thread:$0]  %s398_s1, 512, %s345_s21, [#allocation7], %s309_s0, %s309_s0, %s310_s15  }
  0x23   :  { %301 = dma.done.wait [#allocation4], 128  }
  0x24   :  { %302 = vsyncadd [#allocation4], 4294967168 }
  0x25   :  { %303 = dma.done.wait [#allocation7], 512  }
  0x26   :  { %304 = vsyncadd [#allocation7], 4294966784  ;;  %v311_v0 = vmov 0.0|0.0   ;;  %vm312_vm0 = vmmov 0   ;;  %v313_v1 = vmov 0.0   ;;  %v54_v2 = vld [vmem:[#allocation6] sm:$0xff]  ;;  %v172_v33 = vlaneseq }
  0x27   :  { %219 = vmatprep.subr.bf16.mxu0 %v311_v0  ;;  %216 = vmatprep.mubr.msk.f32.mxu0 %vm312_vm0, %v313_v1  ;;  %v55_v3 = vld [vmem:[#allocation6 + $0x8] sm:$0xff]  ;;  %v56_v4 = vld [vmem:[#allocation6 + $0x10] sm:$0xff]  ;;  %v57_v6 = vld [vmem:[#allocation6 + $0x18] sm:$0xff]  ;;  %vm58_vm1 = vcmask 261120   ;;  %s314_s22 = smov [#allocation8]  }
  0x28   :  { %v220_v5 = vpack.c.bf16 %v55_v3, %v54_v2  ;;  %v223_v7 = vpack.c.bf16 %v57_v6, %v56_v4  ;;  %v53_v8 = vld [vmem:[#allocation3] sm:$0xff]  ;;  %v173_v34 = vshrl.u32 %v172_v33, 7  ;;  %s191_s23 = sshll.u32 %s314_s22, 4  ;;  %s192_s23 = int_to_ptr.vmem [resolvable:$true] %s191_s23 }
  0x29   :  { %v202_v9 = vld [vmem:[%s399_s2] ss:$0 sm:$0xff]  ;;  %s279_s24 = scalar_lea.vmem %s192_s23, 128  ;;  %p284_p3 = scmp.lt.s32.totalorder %s192_s23, %s192_s23 }
  0x2a   :  { %221 = vmatpush3.bf16.msra.mxu0 %v220_v5  ;;  %v167_v35 = vld [vmem:[%s400_s3] sm:$0x1]  ;;  %v174_v36 = vsub.s32 0, %v173_v34  ;;  %p280_p2 = scmp.ne.s32.totalorder %s192_s23, %s279_s24  ;;  %p285_p4 = scmp.lt.s32.totalorder %s279_s24, %s279_s24 }
  0x2b   :  { %222 = vmatprep.subr.bf16.mxu0 %v311_v0  ;;  %v169_v39 = vld [vmem:[%s401_s4] sm:$0x1] }
  0x2c   :  { %p286_p5 = por %p285_p4, %p284_p3 }
  0x2e   :  { %224 = vmatpush3.bf16.msra.mxu0 %v223_v7  ;;  %p287_p6 = pnand %p286_p5, %p280_p2 }
  0x31   :  { %217 = vmatmul.mubr.msk.f32.vlgmr.msra.gmra.mrb[0].mxu0 %vm58_vm1, %v53_v8 }
 0x104   :  { %v128_v10 = vpop.f32.mrb[0].mxu0 }
 0x105   :  { %v145_v11 = vadd.f32 %v202_v9, %v128_v10  ;;  %v218_v12 = vpop.f32.mrb[1].mxu0 }
 0x107   :  { %v146_v13 = vmax.f32 %v145_v11, 0.0 }
 0x109   :  { %v147_v14 = vrot.slane %v146_v13, 4  ;;  %v153_v15 = vmul.f32 %v146_v13, %v146_v13 }
 0x10b   :  { %v148_v16 = vadd.f32 %v147_v14, %v146_v13  ;;  %v154_v17 = vrot.slane %v153_v15, 4 }
 0x10d   :  { %v149_v18 = vrot.slane %v148_v16, 2  ;;  %v155_v19 = vadd.f32 %v154_v17, %v153_v15 }
 0x10f   :  { %v150_v20 = vadd.f32 %v149_v18, %v148_v16  ;;  %v156_v21 = vrot.slane %v155_v19, 2 }
 0x111   :  { %v151_v22 = vrot.slane %v150_v20, 1  ;;  %v157_v23 = vadd.f32 %v156_v21, %v155_v19 }
 0x113   :  { %v158_v24 = vrot.slane %v157_v23, 1  ;;  %v152_v25 = vadd.f32 %v151_v22, %v150_v20 }
 0x115   :  { %v159_v26 = vadd.f32 %v158_v24, %v157_v23  ;;  %v160_v27 = vmul.f32 0.125, %v152_v25 }
 0x117   :  { %v161_v28 = vmul.f32 0.125, %v159_v26  ;;  %v162_v29 = vmul.f32 %v160_v27, %v160_v27 }
 0x119   :  { %v163_v30 = vsub.f32 %v161_v28, %v162_v29 }
 0x11b   :  { %v164_v31 = vmax.f32 %v163_v30, 0.0 }
 0x11d   :  { %v165_v32 = vadd.f32 1e-05, %v164_v31 }
 0x11f   :  { %233 = vrsqrt.f32 %v165_v32 }
 0x129   :  { %v234_v37 = vpop.eup %233 }
 0x12a   :  { %v168_v38 = vmul.f32 %v234_v37, %v167_v35 }
 0x12c   :  { %v170_v40 = vmul.f32 %v168_v38, %v160_v27  ;;  %v175_v41 = vrot.slane %v168_v38, %v174_v36 }
 0x12e   :  { %v171_v42 = vsub.f32 %v169_v39, %v170_v40  ;;  %v176_v43 = vmul.f32 %v175_v41, %v146_v13 }
 0x130   :  { %v181_v44 = vrot.slane %v171_v42, %v174_v36 }
 0x132   :  { %v183_v45 = vadd.f32 %v181_v44, %v176_v43 }
 0x134   :  { %184 = vst [vmem:[#allocation8] sm:$0xff] %v183_v45 }
 0x135   :  { %290 = shalt.err (!%p287_p6)
}
 0x136   :  { %s291_s4 = scalar_lea.hbm %s402_s5, 128 }
 0x137   :  { %p292_p7 = scmp.ne.s32.totalorder %s402_s5, %s291_s4  ;;  %p295_p8 = scmp.lt.u32.totalorder %s291_s4, %s402_s5 }
 0x139   :  { %p297_p9 = pnand %p295_p8, %p292_p7 }
 0x13b   :  { %300 = shalt.err (!%p297_p9)
}
 0x13c   :  { %194 = dma.vmem_to_hbm [thread:$0]  %s192_s23, 128, %s402_s5, [#allocation5]  }
 0x13d   :  { %305 = dma.done.wait [#allocation5], 128  }
 0x13e   :  { %306 = vsyncadd [#allocation5], 4294967168 }
 0x13f   :  { %198 = vsyncpa [#allocation4], 1 }
 0x140   :  { %199 = vsyncpa [#allocation7], 1 }
 0x141   :  { %200 = vsyncpa [#allocation5], 1 }

</bundles_post_ra>
